<compile_context>
chip_gen: v7x
topology: tpu7x:2x2x1
jax: 0.10.0
libtpu: 0.0.40
codegen_flags: <defaults>
</compile_context>

<pallas_src>
import numpy as np
import jax
import jax.numpy as jnp
from jax.experimental import pallas as pl
from jax.experimental.pallas import tpu as pltpu

_HALF_PI = np.float32(np.pi / 2.0)

_LANE_CANDIDATES = (1024, 512, 256, 128)   # lane-dense widths (multiples of 128)
_TARGET_BLOCK_BYTES = 4 * 1024 * 1024      # ~4 MiB blocks: v6e sweet spot, good on v7x
_VMEM_LIMIT_BYTES = 40 * 1024 * 1024       # in+out double-buffered fits with headroom
_SMALL_N = 32 * 1024                       # lane-misaligned sizes below this: one block


def _noise_schedule_kernel(t_ref, o_ref):
    # Compute in f32 (v5e has no bf16 VPU path); cast back on store.
    t = t_ref[...].astype(jnp.float32)
    c = jnp.cos(t * _HALF_PI)              # VPU polynomial; hidden under HBM stalls
    o_ref[...] = (c * c).astype(o_ref.dtype)


def _whole_array_call(x: jax.Array) -> jax.Array:
    """Single whole-array block (block dims == array dims -> always legal)."""
    flat = x.reshape(1, -1)
    out = pl.pallas_call(
        _noise_schedule_kernel,
        out_shape=jax.ShapeDtypeStruct(flat.shape, flat.dtype),
    )(flat)
    return out.reshape(x.shape)


def _call_2d(x2d: jax.Array) -> jax.Array:
    """Elementwise kernel over a lane-dense (rows, W) slab; W multiple of 128."""
    rows, w = x2d.shape
    itemsize = x2d.dtype.itemsize
    # Largest multiple-of-8 row count giving ~_TARGET_BLOCK_BYTES per block.
    max_rows = max(8, (_TARGET_BLOCK_BYTES // (w * itemsize)) // 8 * 8)

    if rows <= max_rows:
        # One block covering the whole slab: no grid plumbing, no pipelining.
        return pl.pallas_call(
            _noise_schedule_kernel,
            out_shape=jax.ShapeDtypeStruct((rows, w), x2d.dtype),
        )(x2d)

    block_rows = max_rows
    grid = (pl.cdiv(rows, block_rows),)     # partial last block is masked by Pallas
    return pl.pallas_call(
        _noise_schedule_kernel,
        out_shape=jax.ShapeDtypeStruct((rows, w), x2d.dtype),
        grid_spec=pltpu.PrefetchScalarGridSpec(
            num_scalar_prefetch=0,
            grid=grid,
            in_specs=[pl.BlockSpec((block_rows, w), lambda i: (i, 0))],
            out_specs=pl.BlockSpec((block_rows, w), lambda i: (i, 0)),
        ),
        compiler_params=pltpu.CompilerParams(
            dimension_semantics=("parallel",),       # lets v7x shard across its 2 TCs
            vmem_limit_bytes=_VMEM_LIMIT_BYTES,
        ),
    )(x2d)


@jax.jit
def noise_schedule_fixed(t: jax.Array) -> jax.Array:
    """Pallas TPU implementation of NoiseSchedule_Fixed.forward."""
    if t.size == 0:
        return t
    n = t.size
    flat = t.reshape(-1)                     # contiguous, layout-preserving

    # Preferred path: zero extra HBM passes — lane-dense slab.
    w = next((c for c in _LANE_CANDIDATES if n % c == 0), None)
    if w is not None:
        return _call_2d(flat.reshape(n // w, w)).reshape(t.shape)

    # Lane-misaligned & small: single whole-array block (launch-latency bound).
    if n <= _SMALL_N:
        return _whole_array_call(flat).reshape(t.shape)

    # Lane-misaligned & large: tiled aligned prefix + tiny tail, one concat
    # (replaces the old full-array pad + slice, which cost two extra HBM passes).
    w = _LANE_CANDIDATES[0]
    rows = n // w
    head = _call_2d(flat[: rows * w].reshape(rows, w)).reshape(-1)
    tail = _whole_array_call(flat[rows * w:])
    return jnp.concatenate([head, tail]).reshape(t.shape)


if __name__ == "__main__":
    key = jax.random.PRNGKey(0)
    k1, k2, k3, k4 = jax.random.split(key, 4)

    def ref(x):
        return jnp.cos(x * (np.pi / 2.0)) ** 2

    # Canonical small module-style input: diffusion timesteps in [0, 1].
    t_small = jax.random.uniform(k1, (2, 4, 16, 16), dtype=jnp.float32)
    y_small = jax.block_until_ready(noise_schedule_fixed(t_small))
    np.testing.assert_allclose(np.asarray(y_small), np.asarray(ref(t_small)),
                               rtol=1e-6, atol=1e-6)
    assert y_small.shape == t_small.shape and y_small.dtype == t_small.dtype

    # Larger aligned input: exercises the multi-block "parallel" grid path.
    t_big = jax.random.uniform(k2, (2048, 2048), dtype=jnp.float32)
    y_big = jax.block_until_ready(noise_schedule_fixed(t_big))
    np.testing.assert_allclose(np.asarray(y_big), np.asarray(ref(t_big)),
                               rtol=1e-6, atol=1e-6)
    assert y_big.shape == t_big.shape and y_big.dtype == t_big.dtype

    # Small lane-misaligned input: whole-array single-block fallback.
    t_odd = jax.random.uniform(k3, (3, 5, 7), dtype=jnp.float32)
    y_odd = jax.block_until_ready(noise_schedule_fixed(t_odd))
    np.testing.assert_allclose(np.asarray(y_odd), np.asarray(ref(t_odd)),
                               rtol=1e-6, atol=1e-6)
    assert y_odd.shape == t_odd.shape

    # Large lane-misaligned input: aligned-prefix + tail path (no full-array pad).
    t_rag = jax.random.uniform(k4, (40_065,), dtype=jnp.float32)
    y_rag = jax.block_until_ready(noise_schedule_fixed(t_rag))
    np.testing.assert_allclose(np.asarray(y_rag), np.asarray(ref(t_rag)),
                               rtol=1e-6, atol=1e-6)
    assert y_rag.shape == t_rag.shape

    print("KERNEL_OK")
</pallas_src>

<mosaic_0001>
module attributes {stable_mosaic.version = 11 : i64} {
  func.func @_noise_schedule_kernel(%arg0: memref<2x1024xf32, #tpu.memory_space<vmem>>, %arg1: memref<2x1024xf32, #tpu.memory_space<vmem>>) attributes {dimension_semantics = [], scalar_prefetch = 0 : i64, scratch_operands = 0 : i64, tpu.core_type = #tpu.core_type<tc>} {
    %c0 = arith.constant 0 : index
    %c0_0 = arith.constant 0 : index
    %0 = vector.load %arg0[%c0, %c0_0] : memref<2x1024xf32, #tpu.memory_space<vmem>>, vector<2x1024xf32>
    %cst = arith.constant 1.57079637 : f32
    %1 = vector.broadcast %cst : f32 to vector<2x1024xf32>
    %2 = arith.mulf %0, %1 : vector<2x1024xf32>
    %3 = math.cos %2 : vector<2x1024xf32>
    %4 = arith.mulf %3, %3 : vector<2x1024xf32>
    %c0_1 = arith.constant 0 : index
    %c0_2 = arith.constant 0 : index
    %5 = vector.load %arg1[%c0_1, %c0_2] : memref<2x1024xf32, #tpu.memory_space<vmem>>, vector<2x1024xf32>
    tpu.vector_store %arg1[%c0_1, %c0_2], %4 {strides = array<i32>} : memref<2x1024xf32, #tpu.memory_space<vmem>>, vector<2x1024xf32>,
    return
  }
}

</mosaic_0001>

<bundles_post_ra>
// kernel: noise_schedule_fixed.1
= control target key start
LH: loop header
LB: loop body
LE: loop exit
PB: predicated region body
PF: predicated region fallthrough
CT: control target
= control target key end

     0   :  { %v256_v26 = vmov 683565275   ;;  %v257_v28 = vmov 2475754826   ;;  %v258_v30 = vmov 2131351028   ;;  %s370_s0 = inlined_call_operand.vmem [shape: f32[2,1024], index: 0, kind: input, shape index: {}]   ;;  %s371_s1 = inlined_call_operand.vmem [shape: f32[2,1024], index: 1, kind: output, shape index: {}]  }
   0x1   :  { %v8_v0 = vld [vmem:[%s370_s0] sm:$0xff]  ;;  %v9_v1 = vld [vmem:[%s370_s0 + $0x8] sm:$0xff]  ;;  %v259_v32 = vmov 2102212464   ;;  %v260_v34 = vmov 920167782  }
   0x2   :  { %v278_v2 = vmul.f32 1.5707964, %v8_v0  ;;  %v280_v3 = vmul.f32 1.5707964, %v9_v1  ;;  %v261_v42 = vmov 1326507024  }
   0x4   :  { %v12_v4 = vand.u32 2147483647, %v278_v2  ;;  %v15_v5 = vand.u32 2139095040, %v278_v2  ;;  %v115_v6 = vand.u32 2147483647, %v280_v3  ;;  %v118_v7 = vand.u32 2139095040, %v280_v3 }
   0x5   :  { %vm14_vm14 = vcmp.lt.s32.totalorder %v278_v2, 0 }
   0x6   :  { %v16_v8 = vshrl.u32 %v15_v5, 23  ;;  %v19_v9 = vand.u32 8388607, %v12_v4  ;;  %v119_v10 = vshrl.u32 %v118_v7, 23  ;;  %v122_v11 = vand.u32 8388607, %v115_v6 }
   0x7   :  { %vm341_vm15 = vcmp.le.f32.partialorder %v12_v4, 0.7853982 }
   0x8   :  { %v226_v12 = vadd.s32 4294967169, %v16_v8  ;;  %v230_v13 = vadd.s32 4294967169, %v119_v10  ;;  %v20_v15 = vor.u32 8388608, %v19_v9  ;;  %v123_v16 = vor.u32 8388608, %v122_v11 }
   0xa   :  { %v22_v14 = vadd.s32 1, %v226_v12  ;;  %v125_v17 = vadd.s32 1, %v230_v13  ;;  %v290_v22 = vshll.u32 %v20_v15, 8  ;;  %v292_v24 = vshll.u32 %v123_v16, 8 }
   0xc   :  { %vm23_vm0 = vcmp.gt.s32.totalorder %v22_v14, 0  ;;  %vm126_vm1 = vcmp.gt.s32.totalorder %v125_v17, 0 }
   0xd   :  { %v24_v18 = vsel %vm23_vm0, %v22_v14, 0  ;;  %v127_v21 = vsel %vm126_vm1, %v125_v17, 0  ;;  %vm117_vm0 = vcmp.lt.s32.totalorder %v280_v3, 0  ;;  %vm353_vm1 = vcmp.le.f32.partialorder %v115_v6, 0.7853982 }
   0xe   :  { %v25_v19 = vshrl.u32 %v24_v18, 5  ;;  %v26_v20 = vand.u32 31, %v24_v18  ;;  %v129_v23 = vand.u32 31, %v127_v21  ;;  %v294_v36 = vshrl.u32 %v127_v21, 5 }
  0x10   :  { %v27_v25 = vsub.s32 32, %v26_v20  ;;  %v29_v27 = vshll.u32 %v256_v26, %v26_v20  ;;  %v32_v29 = vshll.u32 %v257_v28, %v26_v20  ;;  %v35_v31 = vshll.u32 %v258_v30, %v26_v20 }
  0x11   :  { %v38_v33 = vshll.u32 %v259_v32, %v26_v20  ;;  %v41_v35 = vshll.u32 %v260_v34, %v26_v20  ;;  %vm44_vm2 = vcmp.lt.s32.totalorder %v25_v19, 1  ;;  %vm45_vm3 = vcmp.lt.s32.totalorder %v25_v19, 2 }
  0x12   :  { %v28_v37 = vshrl.u32 %v256_v26, %v27_v25  ;;  %v30_v38 = vshrl.u32 %v257_v28, %v27_v25  ;;  %v33_v39 = vshrl.u32 %v258_v30, %v27_v25  ;;  %v36_v40 = vshrl.u32 %v259_v32, %v27_v25 }
  0x13   :  { %v39_v41 = vshrl.u32 %v260_v34, %v27_v25  ;;  %v42_v43 = vshrl.u32 %v261_v42, %v27_v25  ;;  %vm47_vm4 = vcmp.lt.s32.totalorder %v25_v19, 4  ;;  %v130_v47 = vsub.s32 32, %v129_v23 }
  0x14   :  { %v31_v44 = vor.u32 %v30_v38, %v29_v27  ;;  %v34_v45 = vor.u32 %v33_v39, %v32_v29  ;;  %v37_v46 = vor.u32 %v36_v40, %v35_v31  ;;  %vm46_vm5 = vcmp.lt.s32.totalorder %v25_v19, 3 }
  0x15   :  { %v40_v48 = vor.u32 %v39_v41, %v38_v33  ;;  %v43_v49 = vor.u32 %v42_v43, %v41_v35  ;;  %v132_v50 = vshll.u32 %v256_v26, %v129_v23  ;;  %v135_v58 = vshll.u32 %v257_v28, %v129_v23 }
  0x16   :  { %v48_v51 = vsel %vm44_vm2, %v28_v37, %v31_v44  ;;  %v49_v52 = vsel %vm47_vm4, %v37_v46, 2102212464  ;;  %v52_v53 = vsel %vm44_vm2, %v31_v44, %v34_v45  ;;  %v56_v54 = vsel %vm44_vm2, %v34_v45, %v37_v46 }
  0x17   :  { %v50_v55 = vsel %vm46_vm5, %v34_v45, %v49_v52  ;;  %v53_v56 = vsel %vm47_vm4, %v40_v48, 920167782  ;;  %v57_v57 = vsel %vm47_vm4, %v43_v49, 1326507024  ;;  %v131_v61 = vshrl.u32 %v256_v26, %v130_v47 }
  0x18   :  { %v54_v59 = vsel %vm46_vm5, %v37_v46, %v53_v56  ;;  %v58_v60 = vsel %vm46_vm5, %v40_v48, %v57_v57  ;;  %v133_v62 = vshrl.u32 %v257_v28, %v130_v47  ;;  %v51_v63 = vsel %vm45_vm3, %v48_v51, %v50_v55 }
  0x19   :  { %v55_v0 = vsel %vm45_vm3, %v52_v53, %v54_v59  ;;  %v59_v1 = vsel %vm45_vm3, %v56_v54, %v58_v60  ;;  %v136_v5 = vshrl.u32 %v258_v30, %v130_v47  ;;  %v138_v13 = vshll.u32 %v258_v30, %v129_v23 }
  0x1a   :  { %v303_v7 = vmul.u32.u64.low %v290_v22, %v59_v1  ;;  %v304_v8 = vmul.u32.u64.high %v290_v22, %v59_v1, %v303_v7  ;;  %v307_v9 = vmul.u32.u64.low %v290_v22, %v55_v0  ;;  %v308_v10 = vmul.u32.u64.high %v290_v22, %v55_v0, %v307_v9 }
  0x1b   :  { %v134_v11 = vor.u32 %v133_v62, %v132_v50  ;;  %v137_v12 = vor.u32 %v136_v5, %v135_v58  ;;  %v139_v14 = vshrl.u32 %v259_v32, %v130_v47  ;;  %v141_v15 = vshll.u32 %v259_v32, %v129_v23 }
  0x1c   :  { %v142_v16 = vshrl.u32 %v260_v34, %v130_v47  ;;  %v144_v17 = vshll.u32 %v260_v34, %v129_v23  ;;  %v145_v18 = vshrl.u32 %v261_v42, %v130_v47  ;;  %v67_v19 = vmul.u32 %v290_v22, %v51_v63 }
  0x1d   :  { %v140_v20 = vor.u32 %v139_v14, %v138_v13  ;;  %vm147_vm6 = vcmp.lt.s32.totalorder %v294_v36, 1  ;;  %vm148_vm7 = vcmp.lt.s32.totalorder %v294_v36, 2  ;;  %vm69_vm8 = vc.u32 %v304_v8, %v307_v9 }
  0x1e   :  { %v70_v21 = vadd.s32 1, %v308_v10  ;;  %v143_v25 = vor.u32 %v142_v16, %v141_v15  ;;  %vm149_vm9 = vcmp.lt.s32.totalorder %v294_v36, 3  ;;  %v146_v26 = vor.u32 %v145_v18, %v144_v17 }
  0x1f   :  { %vm150_vm10 = vcmp.lt.s32.totalorder %v294_v36, 4  ;;  %v151_v27 = vsel %vm147_vm6, %v131_v61, %v134_v11  ;;  %v155_v23 = vsel %vm147_vm6, %v134_v11, %v137_v12  ;;  %v159_v30 = vsel %vm147_vm6, %v137_v12, %v140_v20 }
  0x20   :  { %v71_v28 = vsel %vm69_vm8, %v70_v21, %v308_v10  ;;  %v152_v22 = vsel %vm150_vm10, %v140_v20, 2102212464  ;;  %v156_v29 = vsel %vm150_vm10, %v143_v25, 920167782  ;;  %v160_v34 = vsel %vm150_vm10, %v146_v26, 1326507024 }
  0x21   :  { %v72_v31 = vadd.s32 %v71_v28, %v67_v19  ;;  %v153_v32 = vsel %vm149_vm9, %v137_v12, %v152_v22  ;;  %v157_v33 = vsel %vm149_vm9, %v140_v20, %v156_v29  ;;  %v161_v38 = vsel %vm149_vm9, %v143_v25, %v160_v34 }
  0x22   :  { %v154_v35 = vsel %vm148_vm7, %v151_v27, %v153_v32  ;;  %v158_v37 = vsel %vm148_vm7, %v155_v23, %v157_v33  ;;  %v162_v40 = vsel %vm148_vm7, %v159_v30, %v161_v38  ;;  %v68_v59 = vadd.s32 %v307_v9, %v304_v8 }
  0x23   :  { %v73_v39 = vadd.s32 536870912, %v72_v31  ;;  %v325_v41 = vmul.u32.u64.low %v292_v24, %v158_v37  ;;  %v326_v42 = vmul.u32.u64.high %v292_v24, %v158_v37, %v325_v41  ;;  %v170_v46 = vmul.u32 %v292_v24, %v154_v35 }
  0x24   :  { %v329_v43 = vmul.u32.u64.low %v292_v24, %v162_v40  ;;  %v330_v44 = vmul.u32.u64.high %v292_v24, %v162_v40, %v329_v43  ;;  %vm104_vm5 = vweird.f32 %v278_v2  ;;  %vm207_vm9 = vweird.f32 %v280_v3 }
  0x25   :  { %v74_v45 = vshrl.u32 %v73_v39, 30  ;;  %v173_v48 = vadd.s32 1, %v326_v42 }
  0x26   :  { %vm172_vm11 = vc.u32 %v330_v44, %v325_v41  ;;  %v171_v15 = vadd.s32 %v325_v41, %v330_v44 }
  0x27   :  { %v75_v47 = vshll.u32 %v74_v45, 30  ;;  %v174_v36 = vsel %vm172_vm11, %v173_v48, %v326_v42  ;;  %v98_v27 = vsub.s32 4, %v74_v45 }
  0x28   :  { %v175_v50 = vadd.s32 %v174_v36, %v170_v46 }
  0x29   :  { %v76_v49 = vsub.s32 %v72_v31, %v75_v47  ;;  %v99_v32 = vsel %vm14_vm14, %v98_v27, %v74_v45 }
  0x2a   :  { %v176_v52 = vadd.s32 536870912, %v175_v50  ;;  %v101_v4 = vsel %vm341_vm15, 0, %v99_v32 }
  0x2b   :  { %v78_v51 = vsub.s32 0, %v76_v49  ;;  %v105_v39 = vand.u32 3, %v101_v4 }
  0x2c   :  { %v177_v54 = vshrl.u32 %v176_v52, 30 }
  0x2d   :  { %v227_v53 = vmin.u32 %v78_v51, %v76_v49  ;;  %vm110_vm2 = vcmp.eq.s32.totalorder %v105_v39, 2  ;;  %vm107_vm3 = vcmp.eq.s32.totalorder %v105_v39, 0  ;;  %vm106_vm4 = vcmp.lt.s32.totalorder %v105_v39, 2 }
  0x2e   :  { %v178_v56 = vshll.u32 %v177_v54, 30  ;;  %v201_v38 = vsub.s32 4, %v177_v54 }
  0x2f   :  { %v80_v55 = vclz %v227_v53 }
  0x30   :  { %v179_v58 = vsub.s32 %v175_v50, %v178_v56  ;;  %v202_v42 = vsel %vm117_vm0, %v201_v38, %v177_v54 }
  0x31   :  { %v228_v57 = vadd.s32 4294967294, %v80_v55  ;;  %v204_v46 = vsel %vm353_vm1, 0, %v202_v42 }
  0x32   :  { %v181_v60 = vsub.s32 0, %v179_v58  ;;  %v208_v36 = vand.u32 3, %v204_v46 }
  0x33   :  { %vm229_vm12 = vcmp.lt.s32.totalorder %v228_v57, 0 }
  0x34   :  { %v83_v24 = vsel %vm229_vm12, 0, %v228_v57  ;;  %v231_v0 = vmin.u32 %v181_v60, %v179_v58  ;;  %vm213_vm6 = vcmp.eq.s32.totalorder %v208_v36, 2  ;;  %vm210_vm7 = vcmp.eq.s32.totalorder %v208_v36, 0 }
  0x35   :  { %v84_v61 = vsub.s32 32, %v83_v24  ;;  %v85_v62 = vshll.u32 %v76_v49, %v83_v24  ;;  %v88_v63 = vsub.s32 4294967266, %v83_v24  ;;  %vm209_vm8 = vcmp.lt.s32.totalorder %v208_v36, 2 }
  0x36   :  { %v183_v7 = vclz %v231_v0 }
  0x37   :  { %v86_v1 = vshrl.u32 %v68_v59, %v84_v61  ;;  %v89_v5 = vadd.s32 127, %v88_v63 }
  0x38   :  { %v232_v12 = vadd.s32 4294967294, %v183_v7 }
  0x39   :  { %v87_v10 = vor.u32 %v86_v1, %v85_v62  ;;  %v90_v11 = vshll.u32 %v89_v5, 23 }
  0x3a   :  { %vm233_vm13 = vcmp.lt.s32.totalorder %v232_v12, 0 }
  0x3b   :  { %v91_v13 = vor.u32 4788187, %v90_v11  ;;  %v94_v14 = vcvt.s32.f32 %v87_v10  ;;  %v186_v8 = vsel %vm233_vm13, 0, %v232_v12 }
  0x3c   :  { %v187_v9 = vsub.s32 32, %v186_v8  ;;  %v188_v17 = vshll.u32 %v179_v58, %v186_v8  ;;  %v191_v18 = vsub.s32 4294967266, %v186_v8 }
  0x3d   :  { %v92_v16 = vand.u32 2147483647, %v91_v13 }
  0x3e   :  { %v189_v20 = vshrl.u32 %v171_v15, %v187_v9  ;;  %v192_v21 = vadd.s32 127, %v191_v18 }
  0x3f   :  { %v95_v19 = vmul.f32 %v94_v14, %v92_v16 }
  0x40   :  { %v190_v23 = vor.u32 %v189_v20, %v188_v17  ;;  %v193_v28 = vshll.u32 %v192_v21, 23 }
  0x41   :  { %v96_v26 = vxor.u32 2147483648, %v95_v19 }
  0x42   :  { %v194_v30 = vor.u32 4788187, %v193_v28  ;;  %v197_v31 = vcvt.s32.f32 %v190_v23 }
  0x43   :  { %v97_v22 = vsel %vm14_vm14, %v96_v26, %v95_v19 }
  0x44   :  { %v100_v29 = vsel %vm341_vm15, %v278_v2, %v97_v22  ;;  %v195_v33 = vand.u32 2147483647, %v194_v30 }
  0x45   :  { %248 = vcosq.f32 %v100_v29 }
  0x46   :  { %250 = vsinq.f32 %v100_v29  ;;  %v198_v34 = vmul.f32 %v197_v31, %v195_v33 }
  0x48   :  { %v199_v37 = vxor.u32 2147483648, %v198_v34 }
  0x4a   :  { %v200_v40 = vsel %vm117_vm0, %v199_v37, %v198_v34 }
  0x4b   :  { %v203_v41 = vsel %vm353_vm1, %v280_v3, %v200_v40 }
  0x4c   :  { %252 = vcosq.f32 %v203_v41 }
  0x4d   :  { %254 = vsinq.f32 %v203_v41 }
  0x4f   :  { %v249_v43 = vpop.eup %248 }
  0x50   :  { %v251_v44 = vpop.eup %250  ;;  %v111_v45 = vxor.u32 2147483648, %v249_v43 }
  0x51   :  { %v108_v6 = vxor.u32 2147483648, %v251_v44 }
  0x52   :  { %v112_v47 = vsel %vm110_vm2, %v111_v45, %v251_v44 }
  0x53   :  { %v109_v48 = vsel %vm107_vm3, %v249_v43, %v108_v6 }
  0x54   :  { %v113_v49 = vsel %vm106_vm4, %v109_v48, %v112_v47 }
  0x55   :  { %v114_v50 = vsel %vm104_vm5, nan, %v113_v49 }
  0x56   :  { %v218_v51 = vmul.f32 %v114_v50, %v114_v50  ;;  %v253_v52 = vpop.eup %252 }
  0x57   :  { %v255_v53 = vpop.eup %254  ;;  %v214_v54 = vxor.u32 2147483648, %v253_v52 }
  0x58   :  { %220 = vst [vmem:[%s371_s1] sm:$0xff] %v218_v51  ;;  %v211_v55 = vxor.u32 2147483648, %v255_v53 }
  0x59   :  { %v215_v2 = vsel %vm213_vm6, %v214_v54, %v255_v53 }
  0x5a   :  { %v212_v56 = vsel %vm210_vm7, %v253_v52, %v211_v55 }
  0x5b   :  { %v216_v57 = vsel %vm209_vm8, %v212_v56, %v215_v2 }
  0x5c   :  { %v217_v58 = vsel %vm207_vm9, nan, %v216_v57 }
  0x5d   :  { %v219_v59 = vmul.f32 %v217_v58, %v217_v58 }
  0x5f   :  { %221 = vst [vmem:[%s371_s1 + $0x8] sm:$0xff] %v219_v59 }

</bundles_post_ra>
